<compile_context>
chip_gen: v7x
topology: tpu7x:2x2x1
jax: 0.10.0
libtpu: 0.0.40
codegen_flags: <defaults>
</compile_context>

<pallas_src>
import jax
import jax.numpy as jnp
from jax.experimental import pallas as pl
from jax.experimental.pallas import tpu as pltpu


def fusion2_kernel(xu_ref, xd_ref, w_ref, b_ref, o_ref):
    # Blocks: xu/xd (1, C, thw); w (C_out, C) BN-scaled; b (C_out, 1); out (1, C_out, thw)
    xu = xu_ref[0].astype(jnp.float32)          # (C, thw)
    xd = xd_ref[0].astype(jnp.float32)

    # Gated fusion (VPU + EUP); z = xd + (xu - xd) * sigmoid(xu + xd)
    score = jax.nn.sigmoid(xu + xd)
    z = xd + (xu - xd) * score

    # 1x1 conv == matmul over channels (MXU): (C_out, C) @ (C, thw) -> (C_out, thw)
    y = jnp.dot(w_ref[...], z, preferred_element_type=jnp.float32)

    # Folded BN bias + ReLU
    y = y + b_ref[...]                          # (C_out, 1) broadcast over lanes
    o_ref[0] = jnp.maximum(y, 0.0).astype(o_ref.dtype)


def fusion2_forward(x_u, x_d, conv_w, bn_gamma, bn_beta, bn_mean, bn_var,
                    *, eps=1e-5, max_tile_hw=4096, vmem_budget_bytes=20 << 20):
    """x_u, x_d: NCHW.  conv_w: (C_out, C_in) weight of the 1x1 conv (no bias)."""
    N, C, H, W = x_u.shape
    C_out = conv_w.shape[0]
    HW = H * W
    out_dtype = x_u.dtype

    # --- Fold BN (inference form) into the conv weight and a per-channel bias.
    scale = (bn_gamma.astype(jnp.float32)
             / jnp.sqrt(bn_var.astype(jnp.float32) + eps))            # (C_out,)
    bias = bn_beta.astype(jnp.float32) - bn_mean.astype(jnp.float32) * scale
    w_scaled = conv_w.astype(jnp.float32) * scale[:, None]            # (C_out, C_in)
    bias2d = bias.reshape(C_out, 1)

    # --- NCHW -> (N, C, H*W): contiguous reshape, no data movement.
    xu3 = x_u.reshape(N, C, HW)
    xd3 = x_d.reshape(N, C, HW)

    # --- Choose a lane-dense spatial tile (multiple of 128) within a VMEM budget.
    # Double-buffered per-step f32 footprint ≈ 2 * (2*C + C_out) * thw * 4 bytes.
    per_lane_bytes = 2 * (2 * C + C_out) * 4
    thw = min(max_tile_hw, max(128, vmem_budget_bytes // per_lane_bytes))
    thw = (thw // 128) * 128
    hw_pad128 = ((HW + 127) // 128) * 128
    thw = min(thw, hw_pad128)
    hw_pad = ((HW + thw - 1) // thw) * thw
    if hw_pad != HW:
        pad = hw_pad - HW
        xu3 = jnp.pad(xu3, ((0, 0), (0, 0), (0, pad)))
        xd3 = jnp.pad(xd3, ((0, 0), (0, 0), (0, pad)))

    n_tiles = hw_pad // thw
    item = jnp.dtype(out_dtype).itemsize
    cost = pl.CostEstimate(
        flops=int(2 * N * HW * C * C_out + 6 * N * C * HW),
        transcendentals=int(N * C * HW),
        bytes_accessed=int(item * (2 * N * C * HW + N * C_out * HW)
                           + 4 * (C * C_out + C_out)),
    )

    out3 = pl.pallas_call(
        fusion2_kernel,
        out_shape=jax.ShapeDtypeStruct((N, C_out, hw_pad), out_dtype),
        grid_spec=pltpu.PrefetchScalarGridSpec(
            num_scalar_prefetch=0,
            grid=(N, n_tiles),
            in_specs=[
                pl.BlockSpec((1, C, thw), lambda n, j: (n, 0, j)),     # x_u
                pl.BlockSpec((1, C, thw), lambda n, j: (n, 0, j)),     # x_d
                pl.BlockSpec((C_out, C), lambda n, j: (0, 0)),         # BN-scaled weight (resident)
                pl.BlockSpec((C_out, 1), lambda n, j: (0, 0)),         # folded BN bias (resident)
            ],
            out_specs=pl.BlockSpec((1, C_out, thw), lambda n, j: (n, 0, j)),
        ),
        compiler_params=pltpu.CompilerParams(
            dimension_semantics=("parallel", "parallel"),
            vmem_limit_bytes=32 << 20,
        ),
        cost_estimate=cost,
    )(xu3, xd3, w_scaled, bias2d)

    # Strip spatial padding and restore NCHW.
    return out3[:, :, :HW].reshape(N, C_out, H, W)


def reference_forward(x_u, x_d, conv_w, bn_gamma, bn_beta, bn_mean, bn_var, eps=1e-5):
    score = jax.nn.sigmoid(x_u + x_d)
    z = x_u * score + x_d * (1 - score)                  # NCHW
    y = jnp.einsum('nchw,oc->nohw', z, conv_w)           # 1x1 conv, no bias
    scale = (bn_gamma / jnp.sqrt(bn_var + eps)).reshape(1, -1, 1, 1)
    bias = (bn_beta - bn_mean * bn_gamma / jnp.sqrt(bn_var + eps)).reshape(1, -1, 1, 1)
    return jnp.maximum(y * scale + bias, 0.0)


def _run_case(key, N, C, H, W):
    k1, k2, k3, k4, k5, k6, k7 = jax.random.split(key, 7)
    x_u = jax.random.normal(k1, (N, C, H, W), jnp.float32)
    x_d = jax.random.normal(k2, (N, C, H, W), jnp.float32)
    conv_w = jax.random.normal(k3, (C, C), jnp.float32) * (1.0 / jnp.sqrt(C))
    bn_gamma = 1.0 + 0.1 * jax.random.normal(k4, (C,), jnp.float32)
    bn_beta = 0.1 * jax.random.normal(k5, (C,), jnp.float32)
    bn_mean = 0.1 * jax.random.normal(k6, (C,), jnp.float32)
    bn_var = jnp.abs(jax.random.normal(k7, (C,), jnp.float32)) + 0.5

    out = fusion2_forward(x_u, x_d, conv_w, bn_gamma, bn_beta, bn_mean, bn_var)
    out = jax.block_until_ready(out)

    ref = reference_forward(x_u, x_d, conv_w, bn_gamma, bn_beta, bn_mean, bn_var)
    assert out.shape == (N, C, H, W)
    assert jnp.allclose(out, ref, atol=1e-4, rtol=1e-4), \
        f"mismatch vs reference for shape {(N, C, H, W)}"


if __name__ == "__main__":
    key = jax.random.PRNGKey(0)
    ka, kb = jax.random.split(key)

    # Lane-aligned spatial size (H*W multiple of 128) — no padding path.
    _run_case(ka, N=2, C=32, H=16, W=16)
    # Ragged spatial size — exercises the pad-to-tile / slice-back path.
    _run_case(kb, N=1, C=32, H=7, W=9)

    print("KERNEL_OK")
</pallas_src>

<mosaic_0001>
module attributes {stable_mosaic.version = 11 : i64} {
  func.func @fusion2_kernel(%arg0: i32, %arg1: i32, %arg2: memref<1x32x256xf32, #tpu.memory_space<vmem>>, %arg3: memref<1x32x256xf32, #tpu.memory_space<vmem>>, %arg4: memref<32x32xf32, #tpu.memory_space<vmem>>, %arg5: memref<32x1xf32, #tpu.memory_space<vmem>>, %arg6: memref<1x32x256xf32, #tpu.memory_space<vmem>>) attributes {dimension_semantics = [#tpu.dimension_semantics<parallel>, #tpu.dimension_semantics<parallel>], iteration_bounds = array<i64: 2, 1>, scalar_prefetch = 0 : i64, scratch_operands = 0 : i64, tpu.core_type = #tpu.core_type<tc>, window_params = [{transform_indices = @transform_0, window_bounds = array<i64: 1, 32, 256>}, {transform_indices = @transform_1, window_bounds = array<i64: 1, 32, 256>}, {pipeline_mode = #tpu.pipeline_mode<synchronous>, transform_indices = @transform_2, window_bounds = array<i64: 32, 32>}, {pipeline_mode = #tpu.pipeline_mode<synchronous>, transform_indices = @transform_3, window_bounds = array<i64: 32, 1>}, {transform_indices = @transform_4, window_bounds = array<i64: 1, 32, 256>}]} {
    %c0 = arith.constant 0 : index
    %c0_0 = arith.constant 0 : index
    %c0_1 = arith.constant 0 : index
    %0 = vector.load %arg2[%c0, %c0_0, %c0_1] : memref<1x32x256xf32, #tpu.memory_space<vmem>>, vector<1x32x256xf32>
    %1 = vector.shape_cast %0 : vector<1x32x256xf32> to vector<32x256xf32>
    %c0_2 = arith.constant 0 : index
    %c0_3 = arith.constant 0 : index
    %c0_4 = arith.constant 0 : index
    %2 = vector.load %arg3[%c0_2, %c0_3, %c0_4] : memref<1x32x256xf32, #tpu.memory_space<vmem>>, vector<1x32x256xf32>
    %3 = vector.shape_cast %2 : vector<1x32x256xf32> to vector<32x256xf32>
    %4 = arith.addf %1, %3 : vector<32x256xf32>
    %5 = arith.negf %4 : vector<32x256xf32>
    %6 = math.exp %5 : vector<32x256xf32>
    %cst = arith.constant 1.000000e+00 : f32
    %7 = vector.broadcast %cst : f32 to vector<32x256xf32>
    %8 = arith.addf %7, %6 : vector<32x256xf32>
    %9 = arith.divf %7, %8 : vector<32x256xf32>
    %10 = arith.subf %1, %3 : vector<32x256xf32>
    %11 = arith.mulf %10, %9 : vector<32x256xf32>
    %12 = arith.addf %3, %11 : vector<32x256xf32>
    %c0_5 = arith.constant 0 : index
    %c0_6 = arith.constant 0 : index
    %13 = vector.load %arg4[%c0_5, %c0_6] : memref<32x32xf32, #tpu.memory_space<vmem>>, vector<32x32xf32>
    %cst_7 = arith.constant dense<0.000000e+00> : vector<32x256xf32>
    %14 = tpu.matmul %13, %12, %cst_7 {dimension_numbers = #tpu.dot_dimension_numbers<[1], [0], [0], [1], [0, 0, 1, 1], [], []>} : vector<32x32xf32>, vector<32x256xf32>, vector<32x256xf32> -> vector<32x256xf32>
    %c0_8 = arith.constant 0 : index
    %c0_9 = arith.constant 0 : index
    %15 = vector.load %arg5[%c0_8, %c0_9] : memref<32x1xf32, #tpu.memory_space<vmem>>, vector<32x1xf32>
    %16 = vector.broadcast %15 : vector<32x1xf32> to vector<32x256xf32>
    %17 = arith.addf %14, %16 : vector<32x256xf32>
    %cst_10 = arith.constant 0.000000e+00 : f32
    %18 = vector.broadcast %cst_10 : f32 to vector<32x256xf32>
    %19 = arith.maximumf %17, %18 : vector<32x256xf32>
    %c0_11 = arith.constant 0 : index
    %c0_12 = arith.constant 0 : index
    %c0_13 = arith.constant 0 : index
    %20 = vector.load %arg6[%c0_11, %c0_12, %c0_13] : memref<1x32x256xf32, #tpu.memory_space<vmem>>, vector<1x32x256xf32>
    %21 = vector.shape_cast %20 : vector<1x32x256xf32> to vector<32x256xf32>
    %22 = vector.shape_cast %19 : vector<32x256xf32> to vector<1x32x256xf32>
    tpu.vector_store %arg6[%c0_11, %c0_12, %c0_13], %22 {strides = array<i32>} : memref<1x32x256xf32, #tpu.memory_space<vmem>>, vector<1x32x256xf32>,
    return
  }
  func.func @transform_0(%arg0: i32, %arg1: i32) -> (i32, i32, i32) {
    %c0_i32 = arith.constant 0 : i32
    %c0_i32_0 = arith.constant 0 : i32
    return %arg0, %c0_i32, %arg1 : i32, i32, i32
  }
  func.func @transform_1(%arg0: i32, %arg1: i32) -> (i32, i32, i32) {
    %c0_i32 = arith.constant 0 : i32
    %c0_i32_0 = arith.constant 0 : i32
    return %arg0, %c0_i32, %arg1 : i32, i32, i32
  }
  func.func @transform_2(%arg0: i32, %arg1: i32) -> (i32, i32) {
    %c0_i32 = arith.constant 0 : i32
    %c0_i32_0 = arith.constant 0 : i32
    %c0_i32_1 = arith.constant 0 : i32
    return %c0_i32, %c0_i32_0 : i32, i32
  }
  func.func @transform_3(%arg0: i32, %arg1: i32) -> (i32, i32) {
    %c0_i32 = arith.constant 0 : i32
    %c0_i32_0 = arith.constant 0 : i32
    %c0_i32_1 = arith.constant 0 : i32
    return %c0_i32, %c0_i32_0 : i32, i32
  }
  func.func @transform_4(%arg0: i32, %arg1: i32) -> (i32, i32, i32) {
    %c0_i32 = arith.constant 0 : i32
    %c0_i32_0 = arith.constant 0 : i32
    return %arg0, %c0_i32, %arg1 : i32, i32, i32
  }
}

</mosaic_0001>

<bundles_post_ra>
// kernel: tpu_custom_call.1
= control target key start
LH: loop header
LB: loop body
LE: loop exit
PB: predicated region body
PF: predicated region fallthrough
CT: control target
= control target key end

     0   :  { %9 = vsyncpa [#allocation3], 0  ;;  %s1348_s0 = inlined_call_operand.hbm [shape: f32[2,32,256], index: 0, kind: input, shape index: {}]   ;;  %s1349_s1 = inlined_call_operand.hbm [shape: f32[2,32,256], index: 1, kind: input, shape index: {}]   ;;  %s1350_s2 = inlined_call_operand.vmem [shape: f32[32,32], index: 2, kind: input, shape index: {}]   ;;  %s1351_s3 = inlined_call_operand.vmem [shape: f32[32,1], index: 3, kind: input, shape index: {}]   ;;  %s1352_s4 = inlined_call_operand.hbm [shape: f32[2,32,256], index: 4, kind: output, shape index: {}]  }
   0x1   :  { %11 = vsyncpa [#allocation3 + $0x1], 0 }
   0x2   :  { %12 = vsyncpa [#allocation6], 0 }
   0x3   :  { %14 = vsyncpa [#allocation6 + $0x1], 0 }
   0x4   :  { %15 = vsyncpa [#allocation4], 0 }
   0x5   :  { %17 = vsyncpa [#allocation4 + $0x1], 0  ;;  %s987_s15 = smov 0   ;;  %s989_s16 = smov 0  }
   0x6   :  { %s991_s17 = smov 0   ;;  %s993_s18 = smov 0  }
   0x7   :  { %s995_s19 = smov 0   ;;  %s997_s20 = smov 0  }
   0x8 LB: > { %s652_s21 = sadd.s32 4294967295, %s951_s20   ;;  %s653_s22 = sadd.s32 4294967294, %s951_s20   ;;  %s951_s20 = sphi %s997_s20, %s23_s20   ;;  %s947_s19 = sphi %s995_s19, %s1372_s19   ;;  %s943_s18 = sphi %s993_s18, %s1371_s18   ;;  %s939_s17 = sphi %s991_s17, %s1370_s17   ;;  %s935_s16 = sphi %s989_s16, %s1369_s16   ;;  %s931_s15 = sphi %s987_s15, %s1368_s15  }
   0x9   : > { %s35_s23 = sadd.s32 1, %s947_s19  ;;  %s44_s24 = sadd.s32 1, %s939_s17 }
   0xa   : > { %p37_p0 = scmp.ge.s32.totalorder %s35_s23, 2  ;;  %p51_p1 = scmp.ne.s32.totalorder %s939_s17, %s935_s16 }
   0xb   : > { %p52_p2 = scmp.eq.s32.totalorder %s951_s20, 0  ;;  %p57_p3 = scmp.ne.s32.totalorder %s935_s16, %s931_s15 }
   0xc   : > { %s1374_s23 = smov (%p37_p0, %s35_s23), 0  ;;  %p58_p5 = scmp.eq.s32.totalorder %s652_s21, 0 }
   0xd   : > { %p1028_p4 = por %p52_p2, %p51_p1  ;;  %s39_s26 = ssub.s32 %s947_s19, %s1374_s23 }
   0xe   : > { %p153_p6 = scmp.eq.s32.totalorder %s652_s21, 1  ;;  %p42_p7 = scmp.eq.s32.totalorder %s39_s26, 0 }
   0xf   : > { %p1034_p8 = por %p58_p5, %p57_p3  ;;  %p159_p10 = scmp.eq.s32.totalorder %s653_s22, 1 }
  0x10   : > { %p1038_p9 = por %p153_p6, %p51_p1  ;;  %p715_p13 = scmp.lt.s32.totalorder %s951_s20, 2 }
  0x11   : > { %s1357_s27 = scalar_select %p1034_p8, 1, 0 }
  0x12   : > { %s1358_s28 = scalar_select %p1038_p9, 1, 0 }
  0x13   : > { %s1043_s29 = scalar_select %p42_p7, %s939_s17, %s44_s24  }
  0x14   : > { %p1045_p11 = por %p159_p10, %p57_p3  ;;  %s1052_s5 = sand.u32 1, %s939_s17  }
  0x15   : > { %s656_s6 = sshll.u32 %s1052_s5, 6  ;;  %s683_s7 = sshll.u32 %s947_s19, 10 }
  0x16   : > { %s1359_s30 = scalar_select %p1045_p11, 1, 0 }
  0x17   : > { %s1061_s10 = scalar_lea.hbm %s1348_s0, %s683_s7  ;;  %s189_s11 = scalar_lea.vmem [#allocation2], %s656_s6 }
  0x18   : > { %s198_s12 = sshll.u32 %s189_s11, 4  ;;  %p1069_p0 = pnand %p715_p13, %p1028_p4  ;;  %s1065_s12 = int_to_ptr.vmem [resolvable:$true] %s198_s12 }
  0x19   : > { %s186_s14 = scalar_lea.sflag [#allocation3], %s1052_s5  ;;  %s805_s21 = scalar_lea.hbm %s1061_s10, 1024 }
  0x1a   : > { %p806_p2 = scmp.ne.s32.totalorder %s1061_s10, %s805_s21  ;;  %p807_p3 = pneg %p1069_p0 }
  0x1b   : > { %s810_s25 = scalar_lea.hbm %s1348_s0, 2048  ;;  %p811_p4 = scmp.lt.u32.totalorder %s1061_s10, %s1348_s0 }
  0x1c   : > { %p808_p5 = pnand %p807_p3, %p806_p2  ;;  %p812_p7 = scmp.lt.u32.totalorder %s810_s25, %s805_s21 }
  0x1d   : > { %p814_p13 = scmp.lt.u32.totalorder %s805_s21, %s1061_s10 }
  0x1e   : > { %p809_p6 = pneg %p808_p5  ;;  %p813_p10 = por %p812_p7, %p811_p4 }
  0x20   : > { %p815_p12 = por %p814_p13, %p813_p10 }
  0x22   : > { %p816_p1 = pnand %p815_p12, %p809_p6 }
  0x24   : > { %819 = shalt.err (!%p816_p1)
}
  0x25   : > { %s820_s9 = scalar_lea.vmem %s1065_s12, 1024  ;;  %s953_s11 = smov [#allocation2]  }
  0x26   : > { %p821_p2 = scmp.ne.s32.totalorder %s1065_s12, %s820_s9  ;;  %s825_s22 = sshll.u32 %s953_s11, 4  ;;  %s826_s22 = int_to_ptr.vmem [resolvable:$false] %s825_s22 }
  0x27   : > { %s827_s24 = scalar_lea.vmem %s826_s22, 2048  ;;  %p828_p9 = scmp.lt.s32.totalorder %s1065_s12, %s826_s22 }
  0x28   : > { %p823_p5 = pnand %p821_p2, %p807_p3  ;;  %p829_p4 = scmp.lt.s32.totalorder %s827_s24, %s820_s9 }
  0x2a   : > { %p824_p11 = pneg %p823_p5  ;;  %p830_p7 = por %p829_p4, %p828_p9 }
  0x2c   : > { %p831_p10 = pnand %p830_p7, %p824_p11 }
  0x2e   : > { %834 = shalt.err (!%p831_p10)
}
  0x2f   : > { %s1354_s21 = smov 256   ;;  %s955_s25 = smov 16  }
  0x30   : > { %707 = dma.hbm_to_vmem [thread:$0]  (!%p1069_p0), %s1061_s10, 1024, %s1065_s12, %s186_s14, %s1354_s21, %s1354_s21, %s955_s25  }
  0x31   : > { %p229_p9 = scmp.lt.s32.totalorder %s951_s20, 3  ;;  %s1111_s9 = scalar_lea.hbm %s1349_s1, %s683_s7 }
  0x32   : > { %p1361_p11 = scmp.ge.s32.totalorder %s951_s20, 1  ;;  %s212_s22 = scalar_lea.vmem [#allocation5], %s656_s6 }
  0x33   : > { %s221_s24 = sshll.u32 %s212_s22, 4  ;;  %s209_s10 = scalar_lea.sflag [#allocation6], %s1052_s5  ;;  %s1121_s24 = int_to_ptr.vmem [resolvable:$true] %s221_s24 }
  0x34   : > { %p1115_p12 = pnand %p1361_p11, %p229_p9  ;;  %s835_s12 = scalar_lea.hbm %s1111_s9, 1024 }
  0x35   : > { %p836_p1 = scmp.ne.s32.totalorder %s1111_s9, %s835_s12  ;;  %s840_s26 = scalar_lea.hbm %s1349_s1, 2048 }
  0x36   : > { %p841_p2 = scmp.lt.u32.totalorder %s1111_s9, %s1349_s1  ;;  %p842_p5 = scmp.lt.u32.totalorder %s840_s26, %s835_s12 }
  0x37   : > { %p838_p6 = pnand %p836_p1, %p807_p3  ;;  %p844_p7 = scmp.lt.u32.totalorder %s835_s12, %s1111_s9 }
  0x38   : > { %p843_p4 = por %p842_p5, %p841_p2 }
  0x39   : > { %p839_p13 = pneg %p838_p6 }
  0x3a   : > { %p845_p10 = por %p844_p7, %p843_p4 }
  0x3c   : > { %p846_p9 = pnand %p845_p10, %p839_p13 }
  0x3e   : > { %849 = shalt.err (!%p846_p9)
}
  0x3f   : > { %s850_s6 = scalar_lea.vmem %s1121_s24, 1024  ;;  %s956_s22 = smov [#allocation5]  }
  0x40   : > { %p851_p11 = scmp.ne.s32.totalorder %s1121_s24, %s850_s6  ;;  %s855_s7 = sshll.u32 %s956_s22, 4  ;;  %s856_s7 = int_to_ptr.vmem [resolvable:$false] %s855_s7 }
  0x41   : > { %s857_s21 = scalar_lea.vmem %s856_s7, 2048  ;;  %p858_p8 = scmp.lt.s32.totalorder %s1121_s24, %s856_s7 }
  0x42   : > { %p853_p1 = pnand %p851_p11, %p807_p3  ;;  %p859_p2 = scmp.lt.s32.totalorder %s857_s21, %s850_s6 }
  0x44   : > { %p854_p6 = pneg %p853_p1  ;;  %p860_p5 = por %p859_p2, %p858_p8 }
  0x46   : > { %p861_p4 = pnand %p860_p5, %p854_p6 }
  0x48   : > { %864 = shalt.err (!%p861_p4)
}
  0x49   : > { %s1363_s12 = smov 256   ;;  %233 = sbr.rel (%p1115_p12) target bundleno = 365 (0x16d), region = 36 }
  0x4a   : > { %710 = dma.hbm_to_vmem [thread:$0]  (!%p1069_p0), %s1111_s9, 1024, %s1121_s24, %s209_s10, %s1363_s12, %s1363_s12, %s955_s25  }
  0x4b   : > { %s1155_s14 = sand.u32 (!%p1115_p12), 1, %s935_s16   ;;  %p1364_p8 = scmp.ne.s32.totalorder (!%p1115_p12), %s1357_s27, 0 }
  0x4c   : > { %s1158_s26 = sshll.u32 (!%p1115_p12), %s1155_s14, 6  ;;  %s236_s13 = scalar_lea.sflag (!%p1115_p12), [#allocation3], %s1155_s14 }
  0x4d   : > { %s1162_s8 = scalar_lea.vmem (!%p1115_p12), [#allocation2], %s1158_s26 }
  0x50   : > { %918 = dma.done.wait (%p1364_p8), %s236_s13, 1024  }
  0x51   : > { %920 = vsyncadd (%p1364_p8), %s236_s13, 4294966272  ;;  %s245_s5 = scalar_lea.sflag [#allocation6], %s1155_s14  ;;  %s1170_s25 = scalar_lea.vmem [#allocation5], %s1158_s26 }
  0x52   : > { %922 = dma.done.wait (%p1364_p8), %s245_s5, 1024  }
  0x53   : > { %924 = vsyncadd (%p1364_p8), %s245_s5, 4294966272  ;;  %v957_v0 = vmov 0.0   ;;  %v958_v1 = vmov 0   ;;  %v1179_v2 = vld [vmem:[%s1162_s8 + $0x8] sm:$0xff]  ;;  %v1182_v3 = vld [vmem:[%s1162_s8 + $0x18] sm:$0xff]  ;;  %vm405_vm0 = vcmask 261120  }
  0x54   : > { %482 = vmatprep.mubr.f32.mxu0 %v957_v0  ;;  %494 = vmatprep.mubr.f32.mxu1 %v957_v0  ;;  %v1185_v4 = vld [vmem:[%s1170_s25 + $0x8] sm:$0xff]  ;;  %v1188_v5 = vld [vmem:[%s1170_s25 + $0x18] sm:$0xff]  ;;  %v1193_v7 = vld [vmem:[%s1162_s8] sm:$0xff]  ;;  %s277_s11 = scalar_lea.vmem [#allocation7], %s1158_s26  ;;  %s685_s10 = sshll.u32 %s943_s18, 10 }
  0x55   : > { %772 = vset.pattern.permute.xlu1 %v958_v1  ;;  %771 = vset.pattern.permute.xlu0 %v958_v1  ;;  %v298_v6 = vadd.f32 %v1185_v4, %v1179_v2  ;;  %v1196_v8 = vld [vmem:[%s1162_s8 + $0x10] sm:$0xff]  ;;  %v300_v9 = vadd.f32 %v1188_v5, %v1182_v3  ;;  %v1201_v10 = vld [vmem:[%s1170_s25] sm:$0xff]  ;;  %v1207_v12 = vld [vmem:[%s1162_s8 + $0x28] sm:$0xff]  ;;  %v354_v54 = vsub.f32 %v1179_v2, %v1185_v4  ;;  %s539_s24 = sshll.u32 %s277_s11, 4  ;;  %s1299_s6 = scalar_lea.hbm %s1352_s4, %s685_s10  ;;  %s1294_s24 = int_to_ptr.vmem [resolvable:$true] %s539_s24 }
  0x56   : > { %v1204_v11 = vld [vmem:[%s1170_s25 + $0x10] sm:$0xff]  ;;  %v297_v14 = vadd.f32 %v1201_v10, %v1193_v7  ;;  %v1214_v16 = vld [vmem:[%s1162_s8 + $0x38] sm:$0xff]  ;;  %v1217_v17 = vld [vmem:[%s1170_s25 + $0x28] sm:$0xff]  ;;  %v356_v55 = vsub.f32 %v1182_v3, %v1188_v5  ;;  %v353_v56 = vsub.f32 %v1193_v7, %v1201_v10  ;;  %s524_s22 = scalar_lea.sflag [#allocation4], %s1155_s14  ;;  %s865_s7 = scalar_lea.vmem %s1294_s24, 1024 }
  0x57   : > { %v667_v13 = vmul.f32 -1.442695, %v298_v6  ;;  %v299_v15 = vadd.f32 %v1204_v11, %v1196_v8  ;;  %v1220_v18 = vld [vmem:[%s1170_s25 + $0x38] sm:$0xff]  ;;  %v669_v19 = vmul.f32 -1.442695, %v300_v9  ;;  %v302_v20 = vadd.f32 %v1217_v17, %v1207_v12  ;;  %v1227_v22 = vld [vmem:[%s1162_s8 + $0x20] sm:$0xff]  ;;  %p866_p0 = scmp.ne.s32.totalorder %s1294_s24, %s865_s7 }
  0x58   : > { %v304_v21 = vadd.f32 %v1220_v18, %v1214_v16  ;;  %v1230_v23 = vld [vmem:[%s1162_s8 + $0x30] sm:$0xff]  ;;  %v1233_v24 = vld [vmem:[%s1170_s25 + $0x20] sm:$0xff]  ;;  %v666_v25 = vmul.f32 -1.442695, %v297_v14  ;;  %v384_v36 = vld [vmem:[%s1351_s3 + $0x18] sm:$0xff]  ;;  %v355_v58 = vsub.f32 %v1196_v8, %v1204_v11  ;;  %v358_v61 = vsub.f32 %v1207_v12, %v1217_v17  ;;  %p1365_p3 = scmp.ne.s32.totalorder %s1358_s28, 0 }
  0x59   : > { %773 = vpow2.f32 %v667_v13  ;;  %v668_v26 = vmul.f32 -1.442695, %v299_v15  ;;  %v1236_v27 = vld [vmem:[%s1170_s25 + $0x30] sm:$0xff]  ;;  %v671_v28 = vmul.f32 -1.442695, %v302_v20  ;;  %v301_v30 = vadd.f32 %v1233_v24, %v1227_v22  ;;  %v381_v33 = vld [vmem:[%s1351_s3] sm:$0xff] }
  0x5a   : > { %775 = vpow2.f32 %v669_v19  ;;  %v673_v29 = vmul.f32 -1.442695, %v304_v21  ;;  %v303_v31 = vadd.f32 %v1236_v27, %v1230_v23  ;;  %v383_v32 = vld [vmem:[%s1351_s3 + $0x10] sm:$0xff]  ;;  %387 = vperm.xlu0 %771, %v381_v33   ;;  %v382_v37 = vld [vmem:[%s1351_s3 + $0x8] sm:$0xff]  ;;  %v360_v1 = vsub.f32 %v1214_v16, %v1220_v18  ;;  %p867_p12 = pnand %p866_p0, %p1365_p3  ;;  %s959_s21 = smov [#allocation7]  }
  0x5b   : > { %777 = vpow2.f32 %v666_v25  ;;  %397 = vperm.xlu1 %772, %v383_v32   ;;  %v670_v34 = vmul.f32 -1.442695, %v301_v30  ;;  %v357_v7 = vsub.f32 %v1227_v22, %v1233_v24  ;;  %v359_v14 = vsub.f32 %v1230_v23, %v1236_v27  ;;  %s869_s12 = sshll.u32 %s959_s21, 4  ;;  %s870_s12 = int_to_ptr.vmem [resolvable:$false] %s869_s12 }
  0x5c   : > { %779 = vpow2.f32 %v668_v26  ;;  %v672_v35 = vmul.f32 -1.442695, %v303_v31  ;;  %p868_p13 = pneg %p867_p12  ;;  %s871_s13 = scalar_lea.vmem %s870_s12, 2048 }
  0x5d   : > { %781 = vpow2.f32 %v671_v28  ;;  %p872_p7 = scmp.lt.s32.totalorder %s1294_s24, %s870_s12  ;;  %p873_p10 = scmp.lt.s32.totalorder %s871_s13, %s865_s7 }
  0x5e   : > { %783 = vpow2.f32 %v673_v29  ;;  %392 = vperm.xlu0 %771, %v382_v37  }
  0x5f   : > { %785 = vpow2.f32 %v670_v34  ;;  %402 = vperm.xlu1 %772, %v384_v36   ;;  %p874_p9 = por %p873_p10, %p872_p7 }
  0x60   : > { %787 = vpow2.f32 %v672_v35 }
  0x61   : > { %p875_p11 = pnand %p874_p9, %p868_p13 }
  0x63   : > { %v774_v38 = vpop.eup %773 }
  0x64   : > { %v776_v39 = vpop.eup %775  ;;  %v330_v40 = vadd.f32 1.0, %v774_v38 }
  0x65   : > { %v778_v41 = vpop.eup %777  ;;  %v332_v42 = vadd.f32 1.0, %v776_v39 }
  0x66   : > { %v780_v43 = vpop.eup %779  ;;  %789 = vrcp.f32 %v330_v40  ;;  %v329_v44 = vadd.f32 1.0, %v778_v41 }
  0x67   : > { %v782_v45 = vpop.eup %781  ;;  %791 = vrcp.f32 %v332_v42  ;;  %v331_v46 = vadd.f32 1.0, %v780_v43 }
  0x68   : > { %v784_v47 = vpop.eup %783  ;;  %793 = vrcp.f32 %v329_v44  ;;  %v334_v48 = vadd.f32 1.0, %v782_v45 }
  0x69   : > { %v786_v49 = vpop.eup %785  ;;  %795 = vrcp.f32 %v331_v46  ;;  %v336_v50 = vadd.f32 1.0, %v784_v47 }
  0x6a   : > { %v788_v51 = vpop.eup %787  ;;  %797 = vrcp.f32 %v334_v48  ;;  %v333_v52 = vadd.f32 1.0, %v786_v49 }
  0x6b   : > { %799 = vrcp.f32 %v336_v50  ;;  %v335_v53 = vadd.f32 1.0, %v788_v51 }
  0x6c   : > { %801 = vrcp.f32 %v333_v52 }
  0x6d   : > { %803 = vrcp.f32 %v335_v53 }
  0x70   : > { %v790_v57 = vpop.eup %789 }
  0x71   : > { %v792_v59 = vpop.eup %791  ;;  %v362_v60 = vmul.f32 %v790_v57, %v354_v54 }
  0x72   : > { %v794_v62 = vpop.eup %793  ;;  %v364_v63 = vmul.f32 %v792_v59, %v356_v55 }
  0x73   : > { %v796_v2 = vpop.eup %795  ;;  %v370_v3 = vadd.f32 %v362_v60, %v1185_v4  ;;  %v361_v6 = vmul.f32 %v794_v62, %v353_v56 }
  0x74   : > { %v798_v9 = vpop.eup %797  ;;  %v372_v8 = vadd.f32 %v364_v63, %v1188_v5  ;;  %v363_v13 = vmul.f32 %v796_v2, %v355_v58 }
  0x75   : > { %v800_v12 = vpop.eup %799  ;;  %v369_v15 = vadd.f32 %v361_v6, %v1201_v10  ;;  %v366_v19 = vmul.f32 %v798_v9, %v358_v61 }
  0x76   : > { %v802_v20 = vpop.eup %801  ;;  %v686_v16 = vpack.c.bf16 %v372_v8, %v370_v3  ;;  %v371_v21 = vadd.f32 %v363_v13, %v1204_v11  ;;  %v368_v4 = vmul.f32 %v800_v12, %v360_v1 }
  0x77   : > { %v804_v25 = vpop.eup %803  ;;  %v374_v26 = vadd.f32 %v366_v19, %v1217_v17  ;;  %v365_v22 = vmul.f32 %v802_v20, %v357_v7  ;;  %v377_v17 = vld [vmem:[%s1350_s2] sm:$0xff] }
  0x78   : > { %687 = vmatprep.subr.bf16.mxu0 %v686_v16  ;;  %694 = vmatprep.subr.bf16.mxu1 %v686_v16  ;;  %v688_v5 = vpack.c.bf16 %v371_v21, %v369_v15  ;;  %v376_v28 = vadd.f32 %v368_v4, %v1220_v18  ;;  %v367_v29 = vmul.f32 %v804_v25, %v359_v14  ;;  %v379_v18 = vld [vmem:[%s1350_s2 + $0x10] sm:$0xff] }
  0x79   : > { %v373_v23 = vadd.f32 %v365_v22, %v1233_v24  ;;  %v378_v24 = vld [vmem:[%s1350_s2 + $0x8] sm:$0xff] }
  0x7a   : > { %689 = vmatpush1.bf16.msra.mxu0 %v688_v5  ;;  %696 = vmatpush1.bf16.msra.mxu1 %v688_v5  ;;  %v690_v10 = vpack.c.bf16 %v376_v28, %v374_v26  ;;  %v375_v30 = vadd.f32 %v367_v29, %v1236_v27  ;;  %v380_v27 = vld [vmem:[%s1350_s2 + $0x18] sm:$0xff] }
  0x7c   : > { %691 = vmatprep.subr.bf16.mxu0 %v690_v10  ;;  %695 = vmatprep.subr.bf16.mxu1 %v690_v10  ;;  %v692_v11 = vpack.c.bf16 %v375_v30, %v373_v23 }
  0x7e   : > { %693 = vmatpush1.bf16.msra.mxu0 %v692_v11  ;;  %697 = vmatpush1.bf16.msra.mxu1 %v692_v11 }
  0x81   : > { %674 = vmatmul.mubr.msk.f32.vlgmr.msra.gmra.mrb[0].mxu0 %vm405_vm0, %v377_v17  ;;  %676 = vmatmul.mubr.msk.f32.vlgmr.msra.gmra.mrb[0].mxu1 %vm405_vm0, %v379_v18 }
  0x82   : > { %488 = vmatprep.mubr.f32.mxu0 %v957_v0  ;;  %500 = vmatprep.mubr.f32.mxu1 %v957_v0 }
  0x85   : > { %675 = vmatmul.mubr.msk.f32.gmra.mrb[2].mxu0 %vm405_vm0, %v378_v24  ;;  %677 = vmatmul.mubr.msk.f32.gmra.mrb[2].mxu1 %vm405_vm0, %v380_v27 }
  0xd9   : > { %v388_v32 = vpop.permute.xlu0 %387 }
  0xda   : > { %v398_v31 = vpop.permute.xlu1 %397 }
  0xdd   : > { %v393_v43 = vpop.permute.xlu0 %392 }
  0xde   : > { %v403_v42 = vpop.permute.xlu1 %402 }
 0x154   : > { %v484_v33 = vpop.f32.mrb[0].mxu0  ;;  %v496_v34 = vpop.f32.mrb[0].mxu1 }
 0x155   : > { %v485_v35 = vadd.f32 %v484_v33, %v388_v32  ;;  %v497_v36 = vadd.f32 %v496_v34, %v398_v31  ;;  %v486_v37 = vpop.f32.mrb[1].mxu0  ;;  %v498_v0 = vpop.f32.mrb[1].mxu1 }
 0x156   : > { %v487_v38 = vadd.f32 %v486_v37, %v388_v32  ;;  %v499_v39 = vadd.f32 %v498_v0, %v398_v31 }
 0x157   : > { %v507_v40 = vmax.f32 %v485_v35, 0.0  ;;  %v511_v41 = vmax.f32 %v497_v36, 0.0 }
 0x158   : > { %v508_v44 = vmax.f32 %v487_v38, 0.0  ;;  %v512_v45 = vmax.f32 %v499_v39, 0.0  ;;  %v490_v46 = vpop.f32.mrb[2].mxu0  ;;  %v502_v47 = vpop.f32.mrb[2].mxu1 }
 0x159   : > { %515 = vst [vmem:[%s277_s11] sm:$0xff] %v507_v40  ;;  %519 = vst [vmem:[%s277_s11 + $0x20] sm:$0xff] %v511_v41  ;;  %v491_v48 = vadd.f32 %v490_v46, %v393_v43  ;;  %v503_v49 = vadd.f32 %v502_v47, %v403_v42  ;;  %v492_v50 = vpop.f32.mrb[3].mxu0  ;;  %v504_v51 = vpop.f32.mrb[3].mxu1 }
 0x15a   : > { %516 = vst [vmem:[%s277_s11 + $0x8] sm:$0xff] %v508_v44  ;;  %520 = vst [vmem:[%s277_s11 + $0x28] sm:$0xff] %v512_v45  ;;  %v493_v52 = vadd.f32 %v492_v50, %v393_v43  ;;  %v505_v53 = vadd.f32 %v504_v51, %v403_v42 }
 0x15b   : > { %v509_v54 = vmax.f32 %v491_v48, 0.0  ;;  %v513_v55 = vmax.f32 %v503_v49, 0.0 }
 0x15c   : > { %v510_v56 = vmax.f32 %v493_v52, 0.0  ;;  %v514_v57 = vmax.f32 %v505_v53, 0.0 }
 0x15d   : > { %517 = vst [vmem:[%s277_s11 + $0x10] sm:$0xff] %v509_v54  ;;  %521 = vst [vmem:[%s277_s11 + $0x30] sm:$0xff] %v513_v55 }
 0x15e   : > { %518 = vst [vmem:[%s277_s11 + $0x18] sm:$0xff] %v510_v56  ;;  %522 = vst [vmem:[%s277_s11 + $0x38] sm:$0xff] %v514_v57 }
 0x15f   : > { %878 = shalt.err (!%p875_p11)
}
 0x160   : > { %s879_s8 = scalar_lea.hbm %s1299_s6, 1024  ;;  %s883_s27 = scalar_lea.hbm %s1352_s4, 2048 }
 0x161   : > { %p880_p1 = scmp.ne.s32.totalorder %s1299_s6, %s879_s8  ;;  %p884_p5 = scmp.lt.u32.totalorder %s1299_s6, %s1352_s4 }
 0x162   : > { %p885_p4 = scmp.lt.u32.totalorder %s883_s27, %s879_s8  ;;  %p887_p0 = scmp.lt.u32.totalorder %s879_s8, %s1299_s6 }
 0x163   : > { %p881_p6 = pnand %p880_p1, %p1365_p3 }
 0x164   : > { %p886_p8 = por %p885_p4, %p884_p5 }
 0x165   : > { %p882_p2 = pneg %p881_p6 }
 0x166   : > { %p888_p12 = por %p887_p0, %p886_p8 }
 0x168   : > { %p889_p13 = pnand %p888_p12, %p882_p2 }
 0x16a   : > { %892 = shalt.err (!%p889_p13)
}
 0x16b   : > { %s960_s10 = smov 256   ;;  %s961_s26 = smov 16  }
 0x16c   : > { %702 = dma.vmem_to_hbm [thread:$0]  (%p1365_p3), %s1294_s24, 1024, %s1299_s6, %s524_s22, %s960_s10, %s960_s10, %s961_s26  }
 0x16d PF: > { %s554_s18 = sand.u32 1, %s931_s15   ;;  %p1366_p7 = scmp.ne.s32.totalorder %s1359_s30, 0 }
 0x16e   : > { %p1367_p10 = scmp.ge.s32.totalorder %s951_s20, 2  ;;  %s555_s7 = scalar_lea.sflag [#allocation4], %s554_s18 }
 0x170   : > { %p712_p9 = pnand %p1367_p10, %p1366_p7 }
 0x172   : > { %926 = dma.done.wait (!%p712_p9), %s555_s7, 1024  }
 0x173   : > { %928 = vsyncadd (!%p712_p9), %s555_s7, 4294966272  ;;  %s23_s20 = sadd.s32 1, %s951_s20   ;;  %s1368_s15 = smov %s935_s16 }
 0x174   : > { %p20_p11 = scmp.ge.s32.totalorder %s23_s20, 4   ;;  %s1369_s16 = smov %s939_s17 }
 0x175   : > { %s1370_s17 = smov %s1043_s29  ;;  %s1371_s18 = smov %s947_s19 }
 0x176   : > { %s1372_s19 = smov %s1374_s23  ;;  %22 = sbr.rel (!%p20_p11) target bundleno = 8 (0x8), region = 94 }
 0x17d   :  { %560 = vsyncpa [#allocation3], 1 }
 0x17e   :  { %562 = vsyncpa [#allocation3 + $0x1], 1 }
 0x17f   :  { %563 = vsyncpa [#allocation6], 1 }
 0x180   :  { %565 = vsyncpa [#allocation6 + $0x1], 1 }
 0x181   :  { %566 = vsyncpa [#allocation4], 1 }
 0x182   :  { %568 = vsyncpa [#allocation4 + $0x1], 1 }

</bundles_post_ra>
